<compile_context>
chip_gen: v7x
topology: tpu7x:2x2x1
jax: 0.10.0
libtpu: 0.0.40
codegen_flags: <defaults>
</compile_context>

<pallas_src>
import math

import jax
import jax.numpy as jnp
import numpy as np
from jax.experimental import pallas as pl
from jax.experimental.pallas import tpu as pltpu

# ---------------------------------------------------------------------------
# Problem constants (from the PyTorch module)
# ---------------------------------------------------------------------------
BATCH = 10
TAU_IN = [1, 1, 1, 1]          # multiplicities for l = 0..3
MAXL_IN = len(TAU_IN) - 1       # 3
MAXL_OUT = 2 * MAXL_IN          # 6  (GElib default: keep all output degrees)

DIN = sum(2 * l + 1 for l in range(MAXL_IN + 1))   # 16 complex dims per batch
D2 = DIN * DIN                                     # 256 flattened outer-product dims


# ---------------------------------------------------------------------------
# Clebsch-Gordan coefficients (Condon-Shortley convention)
# ---------------------------------------------------------------------------
def clebsch_gordan(j1, m1, j2, m2, J, M):
    if M != m1 + m2:
        return 0.0
    if J < abs(j1 - j2) or J > j1 + j2:
        return 0.0
    if abs(m1) > j1 or abs(m2) > j2 or abs(M) > J:
        return 0.0
    f = math.factorial
    pref = math.sqrt(
        (2 * J + 1)
        * f(J + j1 - j2) * f(J - j1 + j2) * f(j1 + j2 - J)
        / f(j1 + j2 + J + 1)
    )
    pref *= math.sqrt(
        f(J + M) * f(J - M) * f(j1 - m1) * f(j1 + m1) * f(j2 - m2) * f(j2 + m2)
    )
    kmin = max(0, j2 - J - m1, j1 - J + m2)
    kmax = min(j1 + j2 - J, j1 - m1, j2 + m2)
    s = 0.0
    for k in range(kmin, kmax + 1):
        s += (-1) ** k / (
            f(k) * f(j1 + j2 - J - k) * f(j1 - m1 - k) * f(j2 + m2 - k)
            * f(J - j2 + m1 + k) * f(J - j1 - m2 + k)
        )
    return pref * s


# ---------------------------------------------------------------------------
# Build the dense CG coefficient tensor for tau = [1,1,1,1] x [1,1,1,1]
#   T[p, i, j] : contribution of x_flat[i] * y_flat[j] to out_flat[p]
# ---------------------------------------------------------------------------
def build_cg_tensor():
    in_off = [0]
    for l in range(MAXL_IN + 1):
        in_off.append(in_off[-1] + (2 * l + 1))

    frags_per_l = []
    tau_out = []
    for l in range(MAXL_OUT + 1):
        frags = [
            (l1, l2)
            for l1 in range(MAXL_IN + 1)
            for l2 in range(MAXL_IN + 1)
            if abs(l1 - l2) <= l <= l1 + l2
        ]
        frags_per_l.append(frags)
        tau_out.append(len(frags))

    part_off = [0]
    for l in range(MAXL_OUT + 1):
        part_off.append(part_off[-1] + (2 * l + 1) * tau_out[l])
    P = part_off[-1]   # 256 for this tau

    T = np.zeros((P, DIN, DIN), dtype=np.float32)
    for l in range(MAXL_OUT + 1):
        base = part_off[l]
        tau = tau_out[l]
        for fidx, (l1, l2) in enumerate(frags_per_l[l]):
            for m1i in range(2 * l1 + 1):
                for m2i in range(2 * l2 + 1):
                    m1 = m1i - l1
                    m2 = m2i - l2
                    m = m1 + m2
                    if abs(m) > l:
                        continue
                    c = clebsch_gordan(l1, m1, l2, m2, l, m)
                    if c != 0.0:
                        p = base + (m + l) * tau + fidx
                        T[p, in_off[l1] + m1i, in_off[l2] + m2i] = c
    return T, tau_out, part_off


def build_expansion_matrix():
    """EXP (DIN, 2*D2):   x @ EXP -> [rep | til]
       rep[b, i*DIN+j] = x[b, i]     (columns 0 .. D2-1)
       til[b, i*DIN+j] = x[b, j]     (columns D2 .. 2*D2-1)
    """
    E = np.zeros((DIN, 2 * D2), dtype=np.float32)
    for i in range(DIN):
        for j in range(DIN):
            E[i, i * DIN + j] = 1.0
            E[j, D2 + i * DIN + j] = 1.0
    return E


# TODO(synk): fragment ordering/normalization assumed to match GElib's
# CGproduct output layout (all (l1,l2) pairs, Condon-Shortley); validated here
# only against the in-script einsum reference.
CG_T, TAU_OUT, PART_OFF = build_cg_tensor()
P_OUT = CG_T.shape[0]                               # 256
# Tflat[i*DIN + j, p] = CG_T[p, i, j]  -> RHS of the CG matmul.
TFLAT_NP = np.ascontiguousarray(np.transpose(CG_T, (1, 2, 0)).reshape(D2, P_OUT))
EXP_NP = build_expansion_matrix()

# Upload constants once; they stay resident across calls.
# CG coefficients in bf16 (halves DMA, 3x fewer MXU passes, ~4e-3 rel error).
TFLAT_DEV = jnp.asarray(TFLAT_NP, dtype=jnp.bfloat16)   # (256, 256) bf16
EXP_DEV = jnp.asarray(EXP_NP)                            # (16, 512)  f32 (exact 0/1)


# ---------------------------------------------------------------------------
# Pallas kernel
#   xr_ref / xi_ref : (B, DIN)   real / imag flat inputs
#   e_ref           : (DIN, 2*D2) constant expansion matrix (f32)
#   t_ref           : (D2, P)     flattened CG coefficients (bf16)
#   o_ref           : (2, B, P)   [0]=real, [1]=imag outputs (f32)
# ---------------------------------------------------------------------------
def cg_product_kernel(xr_ref, xi_ref, e_ref, t_ref, o_ref):
    e = e_ref[...]

    # Expansion matmuls build both outer-product factors lane-dense (no
    # in-kernel reshape/relayout). Kept in f32 to preserve input precision.
    ext_r = jnp.dot(xr_ref[...], e, preferred_element_type=jnp.float32)   # (B, 2*D2)
    ext_i = jnp.dot(xi_ref[...], e, preferred_element_type=jnp.float32)   # (B, 2*D2)

    rep_r, til_r = ext_r[:, :D2], ext_r[:, D2:]       # lane-aligned slices (0, 256)
    rep_i, til_i = ext_i[:, :D2], ext_i[:, D2:]

    # Complex outer product, split re/im (VPU elementwise, f32).
    zr = rep_r * til_r - rep_i * til_i                                     # (B, D2)
    zi = rep_r * til_i + rep_i * til_r                                     # (B, D2)

    # CG contraction on the MXU in bf16, f32 accumulation.
    t = t_ref[...]
    o_ref[0, :, :] = jnp.dot(zr.astype(jnp.bfloat16), t,
                             preferred_element_type=jnp.float32)           # (B, P)
    o_ref[1, :, :] = jnp.dot(zi.astype(jnp.bfloat16), t,
                             preferred_element_type=jnp.float32)           # (B, P)


def _cost_estimate(batch):
    flops = (
        2 * 2 * batch * DIN * (2 * D2)      # two expansion matmuls
        + 2 * 2 * batch * D2 * P_OUT        # two CG matmuls
        + 6 * batch * D2                    # complex combine
    )
    bytes_accessed = (
        2 * batch * DIN * 4                 # xr, xi
        + DIN * 2 * D2 * 4                  # EXP (f32)
        + D2 * P_OUT * 2                    # TFLAT (bf16)
        + 2 * batch * P_OUT * 4             # output
    )
    return pl.CostEstimate(flops=flops, transcendentals=0,
                           bytes_accessed=bytes_accessed)


@jax.jit
def cg_product_pallas(xr, xi):
    B = xr.shape[0]
    out = pl.pallas_call(
        cg_product_kernel,
        out_shape=jax.ShapeDtypeStruct((2, B, P_OUT), jnp.float32),
        in_specs=[
            pl.BlockSpec(memory_space=pltpu.MemorySpace.VMEM),
            pl.BlockSpec(memory_space=pltpu.MemorySpace.VMEM),
            pl.BlockSpec(memory_space=pltpu.MemorySpace.VMEM),
            pl.BlockSpec(memory_space=pltpu.MemorySpace.VMEM),
        ],
        out_specs=pl.BlockSpec(memory_space=pltpu.MemorySpace.VMEM),
        cost_estimate=_cost_estimate(B),
    )(xr, xi, EXP_DEV, TFLAT_DEV)
    return out[0], out[1]


# ---------------------------------------------------------------------------
# Glue: SO3vec <-> flat layout (plain JAX / numpy)
# ---------------------------------------------------------------------------
def so3vec_randn(key, batch, tau):
    """Synthetic equivalent of gelib.SO3vec.randn: complex64 parts (B, 2l+1, tau_l)."""
    parts = []
    for l, t in enumerate(tau):
        key, kr, ki = jax.random.split(key, 3)
        re = jax.random.normal(kr, (batch, 2 * l + 1, t), dtype=jnp.float32)
        im = jax.random.normal(ki, (batch, 2 * l + 1, t), dtype=jnp.float32)
        parts.append(re + 1j * im)
    return parts


def flatten_so3vec(parts):
    # tau = 1 for every part, so just drop the fragment axis and concat m-rows.
    flat = jnp.concatenate([p[:, :, 0] for p in parts], axis=1)   # (B, DIN) complex
    return jnp.real(flat).astype(jnp.float32), jnp.imag(flat).astype(jnp.float32)


def unflatten_output(out_r, out_i):
    out_c = out_r.astype(jnp.complex64) + 1j * out_i.astype(jnp.complex64)
    parts = []
    for l in range(MAXL_OUT + 1):
        lo, hi = PART_OFF[l], PART_OFF[l + 1]
        parts.append(out_c[:, lo:hi].reshape(out_c.shape[0], 2 * l + 1, TAU_OUT[l]))
    return parts


def test_model_forward(parts):
    """Pallas-backed equivalent of Test_Model.forward: CGproduct(inputs, inputs)."""
    xr, xi = flatten_so3vec(parts)
    out_r, out_i = cg_product_pallas(xr, xi)
    return unflatten_output(out_r, out_i)


# ---------------------------------------------------------------------------
# Main: build inputs, run kernel, check against a pure-JAX reference
# ---------------------------------------------------------------------------
if __name__ == "__main__":
    key = jax.random.PRNGKey(0)
    inputs = so3vec_randn(key, BATCH, TAU_IN)

    outputs = test_model_forward(inputs)
    outputs = [jax.block_until_ready(p) for p in outputs]

    # Pure-JAX f32 reference of the same bilinear CG contraction.
    xr, xi = flatten_so3vec(inputs)
    xc = xr.astype(jnp.complex64) + 1j * xi.astype(jnp.complex64)
    ref_flat = jnp.einsum("pij,bi,bj->bp",
                          jnp.asarray(CG_T).astype(jnp.complex64), xc, xc)
    got_flat = jnp.concatenate([p.reshape(BATCH, -1) for p in outputs], axis=1)
    assert got_flat.shape == ref_flat.shape == (BATCH, P_OUT)
    # Tolerance accounts for the bf16 CG-coefficient matmul (~4e-3 rel error).
    np.testing.assert_allclose(np.asarray(got_flat), np.asarray(ref_flat),
                               rtol=2e-2, atol=2e-2)

    # sanity: output type structure (l = 0..6, tau_out = [4,9,11,10,6,3,1])
    for l, p in enumerate(outputs):
        assert p.shape == (BATCH, 2 * l + 1, TAU_OUT[l])
        assert p.dtype == jnp.complex64

    print("KERNEL_OK")
</pallas_src>

<mosaic_0001>
module attributes {stable_mosaic.version = 11 : i64} {
  func.func @cg_product_kernel(%arg0: memref<10x16xf32, #tpu.memory_space<vmem>>, %arg1: memref<10x16xf32, #tpu.memory_space<vmem>>, %arg2: memref<16x512xf32, #tpu.memory_space<vmem>>, %arg3: memref<256x256xbf16, #tpu.memory_space<vmem>>, %arg4: memref<2x10x256xf32, #tpu.memory_space<vmem>>) attributes {dimension_semantics = [], scalar_prefetch = 0 : i64, scratch_operands = 0 : i64, tpu.core_type = #tpu.core_type<tc>} {
    %c0 = arith.constant 0 : index
    %c0_0 = arith.constant 0 : index
    %0 = vector.load %arg2[%c0, %c0_0] : memref<16x512xf32, #tpu.memory_space<vmem>>, vector<16x512xf32>
    %c0_1 = arith.constant 0 : index
    %c0_2 = arith.constant 0 : index
    %1 = vector.load %arg0[%c0_1, %c0_2] : memref<10x16xf32, #tpu.memory_space<vmem>>, vector<10x16xf32>
    %cst = arith.constant dense<0.000000e+00> : vector<10x512xf32>
    %2 = tpu.matmul %1, %0, %cst {dimension_numbers = #tpu.dot_dimension_numbers<[1], [0], [0], [1], [0, 0, 1, 1], [], []>} : vector<10x16xf32>, vector<16x512xf32>, vector<10x512xf32> -> vector<10x512xf32>
    %c0_3 = arith.constant 0 : index
    %c0_4 = arith.constant 0 : index
    %3 = vector.load %arg1[%c0_3, %c0_4] : memref<10x16xf32, #tpu.memory_space<vmem>>, vector<10x16xf32>
    %cst_5 = arith.constant dense<0.000000e+00> : vector<10x512xf32>
    %4 = tpu.matmul %3, %0, %cst_5 {dimension_numbers = #tpu.dot_dimension_numbers<[1], [0], [0], [1], [0, 0, 1, 1], [], []>} : vector<10x16xf32>, vector<16x512xf32>, vector<10x512xf32> -> vector<10x512xf32>
    %5 = vector.extract_strided_slice %2 {offsets = [0, 0], sizes = [10, 256], strides = [1, 1]} : vector<10x512xf32> to vector<10x256xf32>
    %6 = vector.extract_strided_slice %2 {offsets = [0, 256], sizes = [10, 256], strides = [1, 1]} : vector<10x512xf32> to vector<10x256xf32>
    %7 = vector.extract_strided_slice %4 {offsets = [0, 0], sizes = [10, 256], strides = [1, 1]} : vector<10x512xf32> to vector<10x256xf32>
    %8 = vector.extract_strided_slice %4 {offsets = [0, 256], sizes = [10, 256], strides = [1, 1]} : vector<10x512xf32> to vector<10x256xf32>
    %9 = arith.mulf %5, %6 : vector<10x256xf32>
    %10 = arith.mulf %7, %8 : vector<10x256xf32>
    %11 = arith.subf %9, %10 : vector<10x256xf32>
    %12 = arith.mulf %5, %8 : vector<10x256xf32>
    %13 = arith.mulf %7, %6 : vector<10x256xf32>
    %14 = arith.addf %12, %13 : vector<10x256xf32>
    %c0_6 = arith.constant 0 : index
    %c0_7 = arith.constant 0 : index
    %15 = vector.load %arg3[%c0_6, %c0_7] : memref<256x256xbf16, #tpu.memory_space<vmem>>, vector<256x256xbf16>
    %16 = arith.truncf %11 : vector<10x256xf32> to vector<10x256xbf16>
    %cst_8 = arith.constant dense<0.000000e+00> : vector<10x256xf32>
    %17 = tpu.matmul %16, %15, %cst_8 {dimension_numbers = #tpu.dot_dimension_numbers<[1], [0], [0], [1], [0, 0, 1, 1], [], []>} : vector<10x256xbf16>, vector<256x256xbf16>, vector<10x256xf32> -> vector<10x256xf32>
    %c0_9 = arith.constant 0 : index
    %c0_10 = arith.constant 0 : index
    %c0_11 = arith.constant 0 : index
    %18 = vector.load %arg4[%c0_9, %c0_10, %c0_11] : memref<2x10x256xf32, #tpu.memory_space<vmem>>, vector<1x10x256xf32>
    %19 = vector.shape_cast %18 : vector<1x10x256xf32> to vector<10x256xf32>
    %20 = vector.shape_cast %17 : vector<10x256xf32> to vector<1x10x256xf32>
    tpu.vector_store %arg4[%c0_9, %c0_10, %c0_11], %20 {strides = array<i32>} : memref<2x10x256xf32, #tpu.memory_space<vmem>>, vector<1x10x256xf32>,
    %21 = arith.truncf %14 : vector<10x256xf32> to vector<10x256xbf16>
    %cst_12 = arith.constant dense<0.000000e+00> : vector<10x256xf32>
    %22 = tpu.matmul %21, %15, %cst_12 {dimension_numbers = #tpu.dot_dimension_numbers<[1], [0], [0], [1], [0, 0, 1, 1], [], []>} : vector<10x256xbf16>, vector<256x256xbf16>, vector<10x256xf32> -> vector<10x256xf32>
    %c1 = arith.constant 1 : index
    %c0_13 = arith.constant 0 : index
    %c0_14 = arith.constant 0 : index
    %23 = vector.load %arg4[%c1, %c0_13, %c0_14] : memref<2x10x256xf32, #tpu.memory_space<vmem>>, vector<1x10x256xf32>
    %24 = vector.shape_cast %23 : vector<1x10x256xf32> to vector<10x256xf32>
    %25 = vector.shape_cast %22 : vector<10x256xf32> to vector<1x10x256xf32>
    tpu.vector_store %arg4[%c1, %c0_13, %c0_14], %25 {strides = array<i32>} : memref<2x10x256xf32, #tpu.memory_space<vmem>>, vector<1x10x256xf32>,
    return
  }
}

</mosaic_0001>

<bundles_post_ra>
// kernel: cg_product_pallas.1
= control target key start
LH: loop header
LB: loop body
LE: loop exit
PB: predicated region body
PF: predicated region fallthrough
CT: control target
= control target key end

     0   :  { %v778_v3 = vmov 0.0   ;;  %vm27_vm0 = vcmask 130048   ;;  %s968_s2 = inlined_call_operand.vmem [shape: f32[16,512], index: 2, kind: input, shape index: {}]   ;;  %s969_s0 = inlined_call_operand.vmem [shape: f32[10,16], index: 0, kind: input, shape index: {}]   ;;  %s970_s3 = inlined_call_operand.vmem [shape: bf16[256,256], index: 3, kind: input, shape index: {}]   ;;  %s971_s1 = inlined_call_operand.vmem [shape: f32[10,16], index: 1, kind: input, shape index: {}]   ;;  %s972_s4 = inlined_call_operand.vmem [shape: f32[2,10,256], index: 4, kind: output, shape index: {}]  }
   0x1   :  { %v18_v0 = vld [vmem:[%s968_s2 + $0x8] sm:$0xff]  ;;  %v20_v2 = vld [vmem:[%s968_s2 + $0x18] sm:$0xff]  ;;  %98 = vmatprep.mubr.f32.mxu0 %v778_v3  ;;  %175 = vmatprep.mubr.f32.mxu1 %v778_v3  ;;  %v17_v6 = vld [vmem:[%s968_s2] sm:$0xff] }
   0x2   :  { %v22_v1 = vld [vmem:[%s968_s2 + $0x28] sm:$0xff]  ;;  %v24_v5 = vld [vmem:[%s968_s2 + $0x38] sm:$0xff]  ;;  %v21_v7 = vld [vmem:[%s968_s2 + $0x20] sm:$0xff] }
   0x3   :  { %v713_v4 = vpack.c.bf16 %v22_v1, %v18_v0  ;;  %v717_v8 = vpack.c.bf16 %v24_v5, %v20_v2  ;;  %v715_v9 = vpack.c.bf16 %v21_v7, %v17_v6  ;;  %v19_v10 = vld [vmem:[%s968_s2 + $0x10] sm:$0xff]  ;;  %v25_v13 = vld [vmem:[%s969_s0] sm:$0xff]  ;;  %v26_v15 = vld [vmem:[%s969_s0 + $0x8] sm:$0x3] }
   0x4   :  { %v23_v11 = vld [vmem:[%s968_s2 + $0x30] sm:$0xff]  ;;  %v732_v14 = vld [vmem:[%s970_s3 + $0x4] ss:$8 sps:$4 sm:$0xff]   ;;  %v730_v17 = vld [vmem:[%s970_s3] ss:$8 sps:$4 sm:$0xff]  }
   0x5   :  { %714 = vmatprep.subr.bf16.mxu0 %v713_v4  ;;  %v719_v12 = vpack.c.bf16 %v23_v11, %v19_v10  ;;  %718 = vmatprep.subr.bf16.mxu1 %v717_v8  ;;  %v188_v16 = vld [vmem:[%s971_s1] sm:$0xff]  ;;  %v735_v18 = vld [vmem:[%s970_s3 + $0x14] ss:$8 sps:$4 sm:$0xff]   ;;  %v189_v19 = vld [vmem:[%s971_s1 + $0x8] sm:$0x3] }
   0x6   :  { %716 = vmatpush1.bf16.msra.mxu0 %v715_v9  ;;  %v733_v20 = vld [vmem:[%s970_s3 + $0x10] ss:$8 sps:$4 sm:$0xff]   ;;  %v738_v21 = vld [vmem:[%s970_s3 + $0x24] ss:$8 sps:$4 sm:$0xff]   ;;  %v736_v22 = vld [vmem:[%s970_s3 + $0x20] ss:$8 sps:$4 sm:$0xff]  }
   0x7   :  { %720 = vmatpush1.bf16.msra.mxu1 %v719_v12  ;;  %722 = vmatprep.subr.bf16.mxu0 %v713_v4  ;;  %v741_v23 = vld [vmem:[%s970_s3 + $0x34] ss:$8 sps:$4 sm:$0xff]   ;;  %v739_v24 = vld [vmem:[%s970_s3 + $0x30] ss:$8 sps:$4 sm:$0xff]   ;;  %v744_v25 = vld [vmem:[%s970_s3 + $0x44] ss:$8 sps:$4 sm:$0xff]  }
   0x8   :  { %726 = vmatprep.subr.bf16.mxu1 %v717_v8  ;;  %v742_v26 = vld [vmem:[%s970_s3 + $0x40] ss:$8 sps:$4 sm:$0xff]   ;;  %v747_v27 = vld [vmem:[%s970_s3 + $0x54] ss:$8 sps:$4 sm:$0xff]   ;;  %v745_v28 = vld [vmem:[%s970_s3 + $0x50] ss:$8 sps:$4 sm:$0xff]  }
   0x9   :  { %669 = vmatmul.mubr.msk.f32.vlgmr.msra.gmra.mrb[0].mxu0 %vm27_vm0, %v25_v13  ;;  %v750_v29 = vld [vmem:[%s970_s3 + $0x64] ss:$8 sps:$4 sm:$0xff]   ;;  %v748_v30 = vld [vmem:[%s970_s3 + $0x60] ss:$8 sps:$4 sm:$0xff]   ;;  %v753_v31 = vld [vmem:[%s970_s3 + $0x74] ss:$8 sps:$4 sm:$0xff]  }
   0xa   :  { %671 = vmatmul.mubr.msk.f32.vlgmr.msra.gmra.mrb[0].mxu1 %vm27_vm0, %v25_v13  ;;  %724 = vmatpush1.bf16.msra.mxu0 %v715_v9  ;;  %v751_v32 = vld [vmem:[%s970_s3 + $0x70] ss:$8 sps:$4 sm:$0xff]   ;;  %v756_v33 = vld [vmem:[%s970_s3 + $0x84] ss:$8 sps:$4 sm:$0xff]   ;;  %v754_v34 = vld [vmem:[%s970_s3 + $0x80] ss:$8 sps:$4 sm:$0xff]  }
   0xb   :  { %728 = vmatpush1.bf16.msra.mxu1 %v719_v12  ;;  %104 = vmatprep.mubr.f32.mxu0 %v778_v3  ;;  %v759_v35 = vld [vmem:[%s970_s3 + $0x94] ss:$8 sps:$4 sm:$0xff]   ;;  %v757_v36 = vld [vmem:[%s970_s3 + $0x90] ss:$8 sps:$4 sm:$0xff]   ;;  %v762_v37 = vld [vmem:[%s970_s3 + $0xa4] ss:$8 sps:$4 sm:$0xff]  }
   0xc   :  { %181 = vmatprep.mubr.f32.mxu1 %v778_v3  ;;  %568 = vmatprep.subr.bf16.mxu0 %v732_v14  ;;  %v760_v38 = vld [vmem:[%s970_s3 + $0xa0] ss:$8 sps:$4 sm:$0xff]   ;;  %v765_v39 = vld [vmem:[%s970_s3 + $0xb4] ss:$8 sps:$4 sm:$0xff]   ;;  %v763_v40 = vld [vmem:[%s970_s3 + $0xb0] ss:$8 sps:$4 sm:$0xff]  }
   0xd   :  { %670 = vmatmul.mubr.msk.f32.gmra.mrb[2].mxu0 %vm27_vm0, %v26_v15  ;;  %617 = vmatprep.subr.bf16.mxu1 %v732_v14  ;;  %v768_v41 = vld [vmem:[%s970_s3 + $0xc4] ss:$8 sps:$4 sm:$0xff]   ;;  %v766_v42 = vld [vmem:[%s970_s3 + $0xc0] ss:$8 sps:$4 sm:$0xff]   ;;  %v771_v43 = vld [vmem:[%s970_s3 + $0xd4] ss:$8 sps:$4 sm:$0xff]  }
   0xe   :  { %672 = vmatmul.mubr.msk.f32.gmra.mrb[2].mxu1 %vm27_vm0, %v26_v15  ;;  %260 = vmatprep.mubr.f32.mxu0 %v778_v3  ;;  %v769_v44 = vld [vmem:[%s970_s3 + $0xd0] ss:$8 sps:$4 sm:$0xff]   ;;  %v774_v45 = vld [vmem:[%s970_s3 + $0xe4] ss:$8 sps:$4 sm:$0xff]   ;;  %v772_v46 = vld [vmem:[%s970_s3 + $0xe0] ss:$8 sps:$4 sm:$0xff]  }
   0xf   :  { %337 = vmatprep.mubr.f32.mxu1 %v778_v3  ;;  %v777_v47 = vld [vmem:[%s970_s3 + $0xf4] ss:$8 sps:$4 sm:$0xff]   ;;  %v775_v48 = vld [vmem:[%s970_s3 + $0xf0] ss:$8 sps:$4 sm:$0xff]  }
  0x11   :  { %673 = vmatmul.mubr.msk.f32.vlgmr.msra.gmra.mrb[4].mxu0 %vm27_vm0, %v188_v16 }
  0x12   :  { %675 = vmatmul.mubr.msk.f32.vlgmr.msra.gmra.mrb[4].mxu1 %vm27_vm0, %v188_v16  ;;  %266 = vmatprep.mubr.f32.mxu0 %v778_v3 }
  0x13   :  { %343 = vmatprep.mubr.f32.mxu1 %v778_v3  ;;  %569 = vmatpush1.bf16.msra.mxu0 %v730_v17 }
  0x14   :  { %618 = vmatpush1.bf16.msra.mxu1 %v730_v17  ;;  %570 = vmatprep.subr.bf16.mxu0 %v735_v18 }
  0x15   :  { %674 = vmatmul.mubr.msk.f32.gmra.mrb[6].mxu0 %vm27_vm0, %v189_v19  ;;  %619 = vmatprep.subr.bf16.mxu1 %v735_v18 }
  0x16   :  { %676 = vmatmul.mubr.msk.f32.gmra.mrb[6].mxu1 %vm27_vm0, %v189_v19 }
  0x17   :  { %571 = vmatpush1.bf16.msra.mxu0 %v733_v20 }
  0x18   :  { %620 = vmatpush1.bf16.msra.mxu1 %v733_v20  ;;  %572 = vmatprep.subr.bf16.mxu0 %v738_v21 }
  0x19   :  { %621 = vmatprep.subr.bf16.mxu1 %v738_v21 }
  0x1b   :  { %573 = vmatpush1.bf16.msra.mxu0 %v736_v22 }
  0x1c   :  { %622 = vmatpush1.bf16.msra.mxu1 %v736_v22  ;;  %574 = vmatprep.subr.bf16.mxu0 %v741_v23 }
  0x1d   :  { %623 = vmatprep.subr.bf16.mxu1 %v741_v23 }
  0x1f   :  { %575 = vmatpush1.bf16.msra.mxu0 %v739_v24 }
  0x20   :  { %624 = vmatpush1.bf16.msra.mxu1 %v739_v24  ;;  %576 = vmatprep.subr.bf16.mxu0 %v744_v25 }
  0x21   :  { %625 = vmatprep.subr.bf16.mxu1 %v744_v25 }
  0x23   :  { %577 = vmatpush1.bf16.msra.mxu0 %v742_v26 }
  0x24   :  { %626 = vmatpush1.bf16.msra.mxu1 %v742_v26  ;;  %578 = vmatprep.subr.bf16.mxu0 %v747_v27 }
  0x25   :  { %627 = vmatprep.subr.bf16.mxu1 %v747_v27 }
  0x27   :  { %579 = vmatpush1.bf16.msra.mxu0 %v745_v28 }
  0x28   :  { %628 = vmatpush1.bf16.msra.mxu1 %v745_v28  ;;  %580 = vmatprep.subr.bf16.mxu0 %v750_v29 }
  0x29   :  { %629 = vmatprep.subr.bf16.mxu1 %v750_v29 }
  0x2b   :  { %581 = vmatpush1.bf16.msra.mxu0 %v748_v30 }
  0x2c   :  { %630 = vmatpush1.bf16.msra.mxu1 %v748_v30  ;;  %582 = vmatprep.subr.bf16.mxu0 %v753_v31 }
  0x2d   :  { %631 = vmatprep.subr.bf16.mxu1 %v753_v31 }
  0x2f   :  { %583 = vmatpush1.bf16.msra.mxu0 %v751_v32 }
  0x30   :  { %632 = vmatpush1.bf16.msra.mxu1 %v751_v32  ;;  %584 = vmatprep.subr.bf16.mxu0 %v756_v33 }
  0x31   :  { %633 = vmatprep.subr.bf16.mxu1 %v756_v33 }
  0x33   :  { %585 = vmatpush1.bf16.msra.mxu0 %v754_v34 }
  0x34   :  { %634 = vmatpush1.bf16.msra.mxu1 %v754_v34  ;;  %586 = vmatprep.subr.bf16.mxu0 %v759_v35 }
  0x35   :  { %635 = vmatprep.subr.bf16.mxu1 %v759_v35 }
  0x37   :  { %587 = vmatpush1.bf16.msra.mxu0 %v757_v36 }
  0x38   :  { %636 = vmatpush1.bf16.msra.mxu1 %v757_v36  ;;  %588 = vmatprep.subr.bf16.mxu0 %v762_v37 }
  0x39   :  { %637 = vmatprep.subr.bf16.mxu1 %v762_v37 }
  0x3b   :  { %589 = vmatpush1.bf16.msra.mxu0 %v760_v38 }
  0x3c   :  { %638 = vmatpush1.bf16.msra.mxu1 %v760_v38  ;;  %590 = vmatprep.subr.bf16.mxu0 %v765_v39 }
  0x3d   :  { %639 = vmatprep.subr.bf16.mxu1 %v765_v39 }
  0x3f   :  { %591 = vmatpush1.bf16.msra.mxu0 %v763_v40 }
  0x40   :  { %640 = vmatpush1.bf16.msra.mxu1 %v763_v40  ;;  %592 = vmatprep.subr.bf16.mxu0 %v768_v41 }
  0x41   :  { %641 = vmatprep.subr.bf16.mxu1 %v768_v41 }
  0x43   :  { %593 = vmatpush1.bf16.msra.mxu0 %v766_v42 }
  0x44   :  { %642 = vmatpush1.bf16.msra.mxu1 %v766_v42  ;;  %594 = vmatprep.subr.bf16.mxu0 %v771_v43 }
  0x45   :  { %643 = vmatprep.subr.bf16.mxu1 %v771_v43 }
  0x47   :  { %595 = vmatpush1.bf16.msra.mxu0 %v769_v44 }
  0x48   :  { %644 = vmatpush1.bf16.msra.mxu1 %v769_v44  ;;  %596 = vmatprep.subr.bf16.mxu0 %v774_v45 }
  0x49   :  { %645 = vmatprep.subr.bf16.mxu1 %v774_v45 }
  0x4b   :  { %597 = vmatpush1.bf16.msra.mxu0 %v772_v46 }
  0x4c   :  { %646 = vmatpush1.bf16.msra.mxu1 %v772_v46  ;;  %598 = vmatprep.subr.bf16.mxu0 %v777_v47 }
  0x4d   :  { %647 = vmatprep.subr.bf16.mxu1 %v777_v47 }
  0x4f   :  { %599 = vmatpush1.bf16.msra.mxu0 %v775_v48 }
  0x50   :  { %648 = vmatpush1.bf16.msra.mxu1 %v775_v48 }
  0xdc   :  { %v100_v49 = vpop.f32.mrb[0].mxu0 }
  0xdd   :  { %v177_v50 = vpop.f32.mrb[0].mxu1  ;;  %v102_v51 = vpop.f32.mrb[1].mxu0 }
  0xde   :  { %v350_v52 = vmul.f32 %v177_v50, %v100_v49  ;;  %v179_v53 = vpop.f32.mrb[1].mxu1 }
  0xdf   :  { %v351_v54 = vmul.f32 %v179_v53, %v102_v51 }
  0xe0   :  { %v106_v55 = vpop.f32.mrb[2].mxu0 }
  0xe1   :  { %v183_v56 = vpop.f32.mrb[2].mxu1  ;;  %v108_v57 = vpop.f32.mrb[3].mxu0 }
  0xe2   :  { %v352_v58 = vmul.f32 %v183_v56, %v106_v55  ;;  %v185_v59 = vpop.f32.mrb[3].mxu1 }
  0xe3   :  { %v353_v60 = vmul.f32 %v185_v59, %v108_v57 }
  0xe4   :  { %v262_v61 = vpop.f32.mrb[4].mxu0 }
  0xe5   :  { %v366_v62 = vmul.f32 %v262_v61, %v177_v50  ;;  %v339_v63 = vpop.f32.mrb[4].mxu1  ;;  %v264_v0 = vpop.f32.mrb[5].mxu0 }
  0xe6   :  { %v354_v1 = vmul.f32 %v339_v63, %v262_v61  ;;  %v362_v2 = vmul.f32 %v339_v63, %v100_v49  ;;  %v367_v3 = vmul.f32 %v264_v0, %v179_v53  ;;  %v341_v4 = vpop.f32.mrb[5].mxu1 }
  0xe7   :  { %v355_v5 = vmul.f32 %v341_v4, %v264_v0  ;;  %v363_v6 = vmul.f32 %v341_v4, %v102_v51 }
  0xe8   :  { %v358_v7 = vsub.f32 %v350_v52, %v354_v1  ;;  %v370_v8 = vadd.f32 %v366_v62, %v362_v2  ;;  %v268_v9 = vpop.f32.mrb[6].mxu0 }
  0xe9   :  { %v359_v10 = vsub.f32 %v351_v54, %v355_v5  ;;  %v371_v11 = vadd.f32 %v367_v3, %v363_v6  ;;  %v368_v12 = vmul.f32 %v268_v9, %v183_v56  ;;  %v345_v13 = vpop.f32.mrb[6].mxu1  ;;  %v270_v14 = vpop.f32.mrb[7].mxu0 }
  0xea   :  { %v356_v15 = vmul.f32 %v345_v13, %v268_v9  ;;  %v364_v16 = vmul.f32 %v345_v13, %v106_v55  ;;  %v369_v17 = vmul.f32 %v270_v14, %v185_v59  ;;  %v347_v18 = vpop.f32.mrb[7].mxu1 }
  0xeb   :  { %v357_v19 = vmul.f32 %v347_v18, %v270_v14  ;;  %v365_v20 = vmul.f32 %v347_v18, %v108_v57 }
  0xec   :  { %v360_v21 = vsub.f32 %v352_v58, %v356_v15  ;;  %v372_v22 = vadd.f32 %v368_v12, %v364_v16 }
  0xed   :  { %v361_v23 = vsub.f32 %v353_v60, %v357_v19  ;;  %v373_v24 = vadd.f32 %v369_v17, %v365_v20 }
  0xee   :  { %v406_v25 = vpack.c.bf16 %v360_v21, %v358_v7  ;;  %v615_v26 = vpack.c.bf16 %v372_v22, %v370_v8 }
  0xef   :  { %v407_v27 = vpack.c.bf16 %v361_v23, %v359_v10  ;;  %v616_v28 = vpack.c.bf16 %v373_v24, %v371_v11 }
  0xf1   :  { %600 = vmatprep.mubr.bf16.mxu0 %v407_v27  ;;  %649 = vmatprep.mubr.bf16.mxu1 %v616_v28 }
  0xf2   :  { %601 = vmatmul.mubr.bf16.vlgmr.msra.gmra.mrb[8].mxu0 %v406_v25  ;;  %650 = vmatmul.mubr.bf16.vlgmr.msra.gmra.mrb[8].mxu1 %v615_v26 }
 0x1c5   :  { %v602_v29 = vpop.f32.mrb[8].mxu0  ;;  %v651_v30 = vpop.f32.mrb[8].mxu1 }
 0x1c6   :  { %611 = vst [vmem:[%s972_s4] sm:$0xff] %v602_v29  ;;  %709 = vst [vmem:[%s972_s4 + $0x20] sm:$0xff] %v651_v30  ;;  %v604_v31 = vpop.f32.mrb[9].mxu0  ;;  %v653_v32 = vpop.f32.mrb[9].mxu1 }
 0x1c7   :  { %612 = vst [vmem:[%s972_s4 + $0x8] sm:$0xff] %v604_v31  ;;  %710 = vst [vmem:[%s972_s4 + $0x28] sm:$0xff] %v653_v32  ;;  %v606_v33 = vpop.f32.mrb[10].mxu0  ;;  %v655_v34 = vpop.f32.mrb[10].mxu1 }
 0x1c8   :  { %613 = vst [vmem:[%s972_s4 + $0x10] sm:$0x3] %v606_v33  ;;  %711 = vst [vmem:[%s972_s4 + $0x30] sm:$0x3] %v655_v34  ;;  %v608_v35 = vpop.f32.mrb[11].mxu0  ;;  %v657_v36 = vpop.f32.mrb[11].mxu1 }
 0x1c9   :  { %614 = vst [vmem:[%s972_s4 + $0x18] sm:$0x3] %v608_v35  ;;  %712 = vst [vmem:[%s972_s4 + $0x38] sm:$0x3] %v657_v36 }

</bundles_post_ra>
